<compile_context>
chip_gen: v5e
topology: v5e:2x2
jax: 0.10.0
libtpu: 0.0.40
codegen_flags: <defaults>
</compile_context>

<pallas_src>
import math

import jax
import jax.numpy as jnp
from jax.experimental import pallas as pl
from jax.experimental.pallas import tpu as pltpu


# ----------------------------------------------------------------------------
# helpers
# ----------------------------------------------------------------------------
def _round_up(x, m):
    return ((x + m - 1) // m) * m


def _cdiv(a, b):
    return (a + b - 1) // b


def _physical_vmem_bytes():
    """Per-core VMEM capacity; conservative 64 MiB floor (v7x) on failure."""
    try:
        return int(pltpu.get_tpu_info().vmem_capacity_bytes)
    except Exception:
        return 64 * 1024 * 1024


def _sublane_multiple(dtype):
    # f32 -> 8 rows/vreg, bf16 -> 16, int8/fp8 -> 32 (sublane packing)
    return max(8, 32 // jnp.dtype(dtype).itemsize)


def _vmem_budget_bytes():
    # Leave headroom (~30%) below physical for Mosaic internal scratch etc.
    return int(0.70 * _physical_vmem_bytes())


def _plan_n_tiling(d_pad, n_pad0, w_dtype):
    """Choose the output-column tile tn and weight buffer count.

    If the whole (D, N_pad) slab + bias fits comfortably as a single-buffered
    resident block, keep it resident (tn = N_pad, 1 buffer).  Otherwise tile N
    (needed for big heads on v7x's 64 MiB VMEM) and double-buffer the W tiles
    so their DMA overlaps compute.
    """
    w_item = jnp.dtype(w_dtype).itemsize
    slab_budget = (2 * _vmem_budget_bytes()) // 3

    def wb_bytes(tn, bufs):
        return bufs * tn * (d_pad * w_item + 4)   # W tile + f32 bias tile

    if wb_bytes(n_pad0, 1) <= slab_budget:
        return n_pad0, 1
    tn = (slab_budget // (2 * (d_pad * w_item + 4))) // 128 * 128
    tn = max(128, min(int(tn), n_pad0))
    return tn, 2


# ----------------------------------------------------------------------------
# Pallas kernel: fused  out = x @ W_concat + b_concat   (one (tb, tn) tile)
# ----------------------------------------------------------------------------
def _multitask_linear_kernel(x_ref, w_ref, b_ref, o_ref):
    acc = jnp.dot(x_ref[...], w_ref[...],
                  preferred_element_type=jnp.float32)       # MXU, f32 accum
    o_ref[...] = (acc + b_ref[...]).astype(o_ref.dtype)     # f32 epilogue (VPU)


def _fused_linear(x, w_cat, b_cat, tn, w_bufs, out_dtype):
    """x: (B, D), w_cat: (D, N_pad), b_cat: (1, N_pad) -> (B, N_pad) out_dtype.

    Grid = (N tiles, batch tiles); batch tiles stream (double-buffered DMA),
    W/b are resident (single-buffered) when there is a single N tile.
    """
    B, D = x.shape
    Dw, N_pad = w_cat.shape
    assert D == Dw and N_pad % tn == 0
    nn = N_pad // tn

    x_item = jnp.dtype(x.dtype).itemsize
    w_item = jnp.dtype(w_cat.dtype).itemsize
    o_item = jnp.dtype(out_dtype).itemsize
    sub = _sublane_multiple(x.dtype)

    budget = _vmem_budget_bytes()
    wb = w_bufs * tn * (D * w_item + 4)                 # resident/streamed W + b
    per_row = 2 * (D * x_item + tn * o_item)            # double-buffered x + out
    tb = max(sub, (budget - wb) // max(per_row, 1))
    tb = min(int(tb), 1024)
    tb = max(sub, (tb // sub) * sub)

    B_sub = _round_up(max(B, sub), sub)
    if B_sub >= 2 * sub:
        # guarantee >= 2 batch tiles so v7x's second TensorCore gets work
        tb = min(tb, _round_up(_cdiv(B_sub, 2), sub))
    tb = min(tb, B_sub)
    B_pad = _round_up(B_sub, tb)
    nb = B_pad // tb

    if B_pad != B:
        x = jnp.pad(x, ((0, B_pad - B), (0, 0)))

    # VMEM limit sized to the actual need (floored at 16 MiB = v5e default).
    vmem_need = 2 * tb * D * x_item + 2 * tb * tn * o_item + wb
    vmem_limit = int(min(budget, max(16 * 1024 * 1024,
                                     vmem_need + (vmem_need >> 2) + (4 << 20))))

    x_spec = pl.BlockSpec((tb, D), lambda j, i: (i, 0))
    if nn == 1:
        # constant block across the whole grid -> no re-DMA; single buffer
        w_spec = pl.BlockSpec((D, tn), lambda j, i: (0, j),
                              pipeline_mode=pl.Buffered(1))
        b_spec = pl.BlockSpec((1, tn), lambda j, i: (0, j),
                              pipeline_mode=pl.Buffered(1))
    else:
        w_spec = pl.BlockSpec((D, tn), lambda j, i: (0, j))
        b_spec = pl.BlockSpec((1, tn), lambda j, i: (0, j))
    o_spec = pl.BlockSpec((tb, tn), lambda j, i: (i, j))

    cost = pl.CostEstimate(
        flops=int(2 * B_pad * D * N_pad),
        transcendentals=0,
        bytes_accessed=int(B_pad * D * x_item + D * N_pad * w_item
                           + N_pad * 4 + B_pad * N_pad * o_item),
    )

    out = pl.pallas_call(
        _multitask_linear_kernel,
        out_shape=jax.ShapeDtypeStruct((B_pad, N_pad), out_dtype),
        grid_spec=pltpu.PrefetchScalarGridSpec(
            num_scalar_prefetch=0,
            grid=(nn, nb),
            in_specs=[x_spec, w_spec, b_spec],
            out_specs=o_spec,
        ),
        compiler_params=pltpu.CompilerParams(
            dimension_semantics=("parallel", "parallel"),  # 2 TCs on v7x
            vmem_limit_bytes=vmem_limit,
        ),
        cost_estimate=cost,
    )(x, w_cat, b_cat)

    return out[:B]  # drop batch padding once


# ----------------------------------------------------------------------------
# MultiTaskHead: parameter init + one-time fusion + forward wrapper
# ----------------------------------------------------------------------------
def init_multitask_head_params(key, in_features, n_binary=0, n_categorical=0,
                               n_numerical=0, cardinality=()):
    """Deterministic init mimicking torch.nn.Linear's U(-1/sqrt(fan_in), ...)."""
    assert n_categorical == len(cardinality), \
        "require cardinalities for each categorical variable"
    assert n_binary + n_categorical + n_numerical, "need some targets"

    bound = 1.0 / math.sqrt(in_features)
    params = {"binary": None, "categorical": [], "numerical": None}

    def make_linear(k, out_f):
        kw, kb = jax.random.split(k)
        w = jax.random.uniform(kw, (in_features, out_f), jnp.float32,
                               minval=-bound, maxval=bound)
        b = jax.random.uniform(kb, (1, out_f), jnp.float32,
                               minval=-bound, maxval=bound)
        return w, b

    keys = jax.random.split(key, 2 + len(cardinality))
    if n_binary:
        params["binary"] = make_linear(keys[0], n_binary)
    for i, card in enumerate(cardinality):
        params["categorical"].append(make_linear(keys[1 + i], card))
    if n_numerical:
        params["numerical"] = make_linear(keys[-1], n_numerical)
    return params


def prepare_fused_head(params, n_binary, cardinality, n_numerical,
                       compute_dtype=jnp.float32, out_dtype=jnp.float32):
    """One-time fusion of all head weights into a lane-padded slab.

    Done ONCE (outside the forward path) so the per-call graph is just one
    Pallas matmul.  `compute_dtype=jnp.bfloat16` enables the fast MXU path on
    v6e/v7x (accumulation stays f32; expect bf16-level tolerance vs. an f32
    reference).  `out_dtype=jnp.bfloat16` halves output HBM traffic for this
    mem-bound kernel.
    """
    ws, bs, segments = [], [], []
    off = 0

    if params["binary"] is not None:
        w, b = params["binary"]
        ws.append(w); bs.append(b)
        segments.append(("binary", off, w.shape[1])); off += w.shape[1]
    for (w, b), card in zip(params["categorical"], cardinality):
        ws.append(w); bs.append(b)
        segments.append(("categorical", off, card)); off += card
    if params["numerical"] is not None:
        w, b = params["numerical"]
        ws.append(w); bs.append(b)
        segments.append(("continuous", off, w.shape[1])); off += w.shape[1]

    n_total = off
    in_features = ws[0].shape[0]

    # Lane-dense output columns (128).  NOTE: for very large, MXU-bound heads
    # a 256 alignment better fills v6e/v7x's 2x256x256 MXU; 128 is right for
    # these small reconstruction heads and for v5e.
    n_pad0 = _round_up(n_total, 128)

    # For sub-f32 compute dtypes, pad the contraction dim to 128 lanes so x/W
    # vreg layouts are unmasked (zero rows keep results exact).
    d_pad = in_features
    if jnp.dtype(compute_dtype).itemsize < 4:
        d_pad = _round_up(in_features, 128)

    # N-tiling plan (only engages for big heads that would not fit v7x VMEM).
    tn, w_bufs = _plan_n_tiling(d_pad, n_pad0, compute_dtype)
    n_pad = _round_up(n_pad0, tn)

    w_cat = jnp.concatenate(ws, axis=1)       # (D, N_total)
    b_cat = jnp.concatenate(bs, axis=1)       # (1, N_total)
    w_cat = jnp.pad(w_cat, ((0, d_pad - in_features), (0, n_pad - n_total)))
    b_cat = jnp.pad(b_cat, ((0, 0), (0, n_pad - n_total)))

    return {
        "w_cat": w_cat.astype(compute_dtype),
        "b_cat": b_cat.astype(jnp.float32),    # bias stays f32 (added post-MXU)
        "segments": tuple(segments),
        "in_features": in_features,
        "d_pad": d_pad,
        "n_pad": n_pad,
        "tn": tn,
        "w_bufs": w_bufs,
        "compute_dtype": compute_dtype,
        "out_dtype": out_dtype,
    }


def multitask_head_forward(fused, features, split_outputs=True):
    """Fused forward: one tiled Pallas matmul over all heads, then split.

    With split_outputs=False, returns (out, segments) where out is the
    unpadded (B, N_pad) slab — avoids the per-head narrow column slices for
    consumers that can index the slab directly.
    """
    x = features.astype(fused["compute_dtype"])
    if fused["d_pad"] != fused["in_features"]:
        x = jnp.pad(x, ((0, 0), (0, fused["d_pad"] - fused["in_features"])))

    out = _fused_linear(x, fused["w_cat"], fused["b_cat"],
                        fused["tn"], fused["w_bufs"], fused["out_dtype"])

    if not split_outputs:
        return out, fused["segments"]

    # TODO(synk): consumers that can work with (out, segments) directly should
    # use split_outputs=False; each narrow slice below is a small masked-copy
    # XLA op that can cost as much as the kernel for tiny heads.
    outputs = {}
    cat_list = []
    for name, off, size in fused["segments"]:
        piece = out[:, off:off + size]
        if name == "categorical":
            cat_list.append(piece)
        else:
            outputs[name] = piece
    if cat_list:
        outputs["categorical"] = cat_list
    return outputs


# ----------------------------------------------------------------------------
# Demo / self-test
# ----------------------------------------------------------------------------
if __name__ == "__main__":
    key = jax.random.PRNGKey(0)
    k_feat, k_params = jax.random.split(key)

    batch = 8
    in_features = 32
    n_binary = 3
    cardinality = [5, 7]
    n_categorical = len(cardinality)
    n_numerical = 4

    features = jax.random.normal(k_feat, (batch, in_features), jnp.float32)

    params = init_multitask_head_params(
        k_params, in_features,
        n_binary=n_binary, n_categorical=n_categorical,
        n_numerical=n_numerical, cardinality=cardinality)

    # Fuse + pad the head weights ONCE (outside the forward path).  Keep f32
    # compute/output here so the reference check is exact.
    fused = prepare_fused_head(params, n_binary, cardinality, n_numerical,
                               compute_dtype=jnp.float32,
                               out_dtype=jnp.float32)

    outputs = multitask_head_forward(fused, features)
    outputs = jax.block_until_ready(outputs)

    # reference check in plain JAX (f32)
    def ref_linear(x, wb):
        w, b = wb
        return x @ w + b

    ref_bin = ref_linear(features, params["binary"])
    ref_cat = [ref_linear(features, wb) for wb in params["categorical"]]
    ref_num = ref_linear(features, params["numerical"])

    assert outputs["binary"].shape == (batch, n_binary)
    assert outputs["continuous"].shape == (batch, n_numerical)
    assert len(outputs["categorical"]) == n_categorical
    for o, card in zip(outputs["categorical"], cardinality):
        assert o.shape == (batch, card)

    assert jnp.allclose(outputs["binary"], ref_bin, atol=1e-5)
    for o, r in zip(outputs["categorical"], ref_cat):
        assert jnp.allclose(o, r, atol=1e-5)
    assert jnp.allclose(outputs["continuous"], ref_num, atol=1e-5)

    # also exercise the no-split (slab + segments) fast path
    slab, segs = multitask_head_forward(fused, features, split_outputs=False)
    jax.block_until_ready(slab)
    assert slab.shape[0] == batch and slab.shape[1] == fused["n_pad"]

    print("KERNEL_OK")
</pallas_src>

<mosaic_0001>
module attributes {stable_mosaic.version = 11 : i64} {
  func.func @_multitask_linear_kernel(%arg0: i32, %arg1: i32, %arg2: memref<8x32xf32, #tpu.memory_space<vmem>>, %arg3: memref<32x128xf32, #tpu.memory_space<vmem>>, %arg4: memref<1x128xf32, #tpu.memory_space<vmem>>, %arg5: memref<8x128xf32, #tpu.memory_space<vmem>>) attributes {dimension_semantics = [#tpu.dimension_semantics<parallel>, #tpu.dimension_semantics<parallel>], iteration_bounds = array<i64: 1, 1>, scalar_prefetch = 0 : i64, scratch_operands = 0 : i64, tpu.core_type = #tpu.core_type<tc>, window_params = [{transform_indices = @transform_0, window_bounds = array<i64: 8, 32>}, {pipeline_mode = #tpu.pipeline_mode<synchronous>, transform_indices = @transform_1, window_bounds = array<i64: 32, 128>}, {pipeline_mode = #tpu.pipeline_mode<synchronous>, transform_indices = @transform_2, window_bounds = array<i64: 1, 128>}, {transform_indices = @transform_3, window_bounds = array<i64: 8, 128>}]} {
    %c0 = arith.constant 0 : index
    %c0_0 = arith.constant 0 : index
    %0 = vector.load %arg2[%c0, %c0_0] : memref<8x32xf32, #tpu.memory_space<vmem>>, vector<8x32xf32>
    %c0_1 = arith.constant 0 : index
    %c0_2 = arith.constant 0 : index
    %1 = vector.load %arg3[%c0_1, %c0_2] : memref<32x128xf32, #tpu.memory_space<vmem>>, vector<32x128xf32>
    %cst = arith.constant dense<0.000000e+00> : vector<8x128xf32>
    %2 = tpu.matmul %0, %1, %cst {dimension_numbers = #tpu.dot_dimension_numbers<[1], [0], [0], [1], [0, 0, 1, 1], [], []>} : vector<8x32xf32>, vector<32x128xf32>, vector<8x128xf32> -> vector<8x128xf32>
    %c0_3 = arith.constant 0 : index
    %c0_4 = arith.constant 0 : index
    %3 = vector.load %arg4[%c0_3, %c0_4] : memref<1x128xf32, #tpu.memory_space<vmem>>, vector<1x128xf32>
    %4 = vector.broadcast %3 : vector<1x128xf32> to vector<8x128xf32>
    %5 = arith.addf %2, %4 : vector<8x128xf32>
    %c0_5 = arith.constant 0 : index
    %c0_6 = arith.constant 0 : index
    %6 = vector.load %arg5[%c0_5, %c0_6] : memref<8x128xf32, #tpu.memory_space<vmem>>, vector<8x128xf32>
    tpu.vector_store %arg5[%c0_5, %c0_6], %5 {strides = array<i32>} : memref<8x128xf32, #tpu.memory_space<vmem>>, vector<8x128xf32>,
    return
  }
  func.func @transform_0(%arg0: i32, %arg1: i32) -> (i32, i32) {
    %c0_i32 = arith.constant 0 : i32
    %c0_i32_0 = arith.constant 0 : i32
    return %arg1, %c0_i32 : i32, i32
  }
  func.func @transform_1(%arg0: i32, %arg1: i32) -> (i32, i32) {
    %c0_i32 = arith.constant 0 : i32
    %c0_i32_0 = arith.constant 0 : i32
    return %c0_i32, %arg0 : i32, i32
  }
  func.func @transform_2(%arg0: i32, %arg1: i32) -> (i32, i32) {
    %c0_i32 = arith.constant 0 : i32
    %c0_i32_0 = arith.constant 0 : i32
    return %c0_i32, %arg0 : i32, i32
  }
  func.func @transform_3(%arg0: i32, %arg1: i32) -> (i32, i32) {
    %c0_i32 = arith.constant 0 : i32
    return %arg1, %arg0 : i32, i32
  }
}

</mosaic_0001>

<bundles_post_ra>
// kernel: tpu_custom_call.1
= control target key start
LH: loop header
LB: loop body
LE: loop exit
PB: predicated region body
PF: predicated region fallthrough
CT: control target
= control target key end

     0   :  { %8 = vsyncpa [#allocation3], 0  ;;  %s219_s0 = inlined_call_operand.hbm [shape: f32[8,32], index: 0, kind: input, shape index: {}]   ;;  %s220_s1 = inlined_call_operand.hbm [shape: f32[32,128], index: 1, kind: input, shape index: {}]   ;;  %s221_s2 = inlined_call_operand.vmem [shape: f32[1,128], index: 2, kind: input, shape index: {}]   ;;  %s222_s3 = inlined_call_operand.hbm [shape: f32[8,128], index: 3, kind: output, shape index: {}]  }
   0x1   :  { %9 = vsyncpa [#allocation6], 0 }
   0x2   :  { %10 = vsyncpa [#allocation4], 0  ;;  %s16_s14 = sshll.u32 %s219_s0, 4  ;;  %s182_s15 = smov [#allocation2]   ;;  %s17_s14 = int_to_ptr.hbm [resolvable:$true] %s16_s14 }
   0x3   :  { %s18_s16 = sshll.u32 %s182_s15, 4  ;;  %s26_s19 = sshll.u32 %s220_s1, 4  ;;  %s19_s16 = int_to_ptr.vmem [resolvable:$true] %s18_s16  ;;  %s27_s19 = int_to_ptr.hbm [resolvable:$true] %s26_s19 }
   0x4   :  { %21 = dma.hbm_to_vmem [thread:$0]  %s17_s14, 128, %s19_s16, [#allocation3]  }
   0x5   :  { %s183_s20 = smov [#allocation5]   ;;  %s184_s22 = smov 128  }
   0x6   :  { %s28_s21 = sshll.u32 %s183_s20, 4  ;;  %s185_s23 = smov 8   ;;  %s29_s21 = int_to_ptr.vmem [resolvable:$true] %s28_s21 }
   0x7   :  { %34 = dma.hbm_to_vmem [thread:$0]  %s27_s19, 512, %s29_s21, [#allocation6], %s184_s22, %s184_s22, %s185_s23  }
   0x8   :  { %176 = dma.done.wait [#allocation3], 128  }
   0x9   :  { %177 = vsyncadd [#allocation3], 4294967168 }
   0xa   :  { %178 = dma.done.wait [#allocation6], 512  }
   0xb   :  { %179 = vsyncadd [#allocation6], 4294966784  ;;  %v49_v0 = vld [vmem:[#allocation5 + $0x18] sm:$0xff]  ;;  %v48_v1 = vld [vmem:[#allocation5 + $0x10] sm:$0xff]  ;;  %vm54_vm0 = vcmask 261120   ;;  %s186_s24 = smov [#allocation7]  }
   0xc   :  { %70 = vmatpush.msra.mxu0 %v49_v0  ;;  %v47_v2 = vld [vmem:[#allocation5 + $0x8] sm:$0xff]  ;;  %v46_v3 = vld [vmem:[#allocation5] sm:$0xff]  ;;  %v45_v4 = vld [vmem:[#allocation2] sm:$0xff]  ;;  %s84_s25 = sshll.u32 %s186_s24, 4  ;;  %s86_s28 = sshll.u32 %s222_s3, 4  ;;  %s85_s25 = int_to_ptr.vmem [resolvable:$true] %s84_s25  ;;  %s87_s28 = int_to_ptr.hbm [resolvable:$true] %s86_s28 }
   0xd   :  { %v103_v5 = vld [vmem:[%s221_s2] ss:$0 sm:$0xff] }
   0xe   :  { %71 = vmatpush.msra.mxu0 %v48_v1 }
  0x10   :  { %72 = vmatpush.msra.mxu0 %v47_v2 }
  0x12   :  { %73 = vmatpush.msra.mxu0 %v46_v3 }
  0x13   :  { %97 = vmatmul.msk.f32.vlgmr.msra.gmra.mxu0 %vm54_vm0, %v45_v4 }
  0x90   :  { %v75_v6 = vpop.f32.mrf.mxu0 }
  0x91   :  { %v76_v7 = vadd.f32 %v103_v5, %v75_v6 }
  0x93   :  { %78 = vst [vmem:[#allocation7] sm:$0xff] %v76_v7 }
  0x94   :  { %89 = dma.vmem_to_hbm [thread:$0]  %s85_s25, 128, %s87_s28, [#allocation4]  }
  0x95   :  { %180 = dma.done.wait [#allocation4], 128  }
  0x96   :  { %181 = vsyncadd [#allocation4], 4294967168 }
  0x97   :  { %94 = vsyncpa [#allocation3], 1 }
  0x98   :  { %95 = vsyncpa [#allocation6], 1 }
  0x99   :  { %96 = vsyncpa [#allocation4], 1 }

</bundles_post_ra>
